<compile_context>
chip_gen: v7x
topology: tpu7x:2x2x1
jax: 0.10.0
libtpu: 0.0.40
codegen_flags: <defaults>
</compile_context>

<pallas_src>
from functools import lru_cache, partial

import jax
import jax.numpy as jnp
from jax.experimental import pallas as pl
from jax.experimental.pallas import tpu as pltpu


_LANE = 128
_SUBLANE_32B = 8


def _cdiv(a, b):
    return -(-a // b)


def _round_down(a, m):
    return (a // m) * m


def _round_up(a, m):
    return _cdiv(a, m) * m


@lru_cache(maxsize=None)
def _chip_config():
    """Generation-aware block byte target / VMEM budget / core-split policy."""
    vmem = None
    try:
        info = pltpu.get_tpu_info()
        for name in ("vmem_capacity_bytes", "vmem_size_bytes", "vmem_bytes"):
            vmem = getattr(info, name, None)
            if vmem:
                break
    except Exception:
        vmem = None
    if vmem is None:
        # Unknown chip: safe everywhere (24 MiB pipelined footprint <= 32 MiB).
        return {"block_bytes": 4 << 20, "vmem_limit": 32 << 20, "multi_core": False}
    if vmem <= 96 * 1024 * 1024:
        # v7x-class: 64 MiB VMEM per TC, 2 TensorCores per chip.
        return {"block_bytes": 4 << 20, "vmem_limit": 48 << 20, "multi_core": True}
    # v5e / v6e-class: 128 MiB VMEM, single TensorCore.
    return {"block_bytes": 8 << 20, "vmem_limit": 64 << 20, "multi_core": False}


def _choose_view(total, fallback_rl, itemsize, block_bytes, sub):
    """Pick a lane-dense (R, L) view of the flattened tensor.

    L is a multiple of 128 that divides `total`, capped so an 8(/16)-row block
    stays within the byte budget; we prefer an L whose row count is
    sublane-aligned (no VMEM sublane padding).  Because grid blocks always span
    the full L, every block is one contiguous HBM range.
    """
    if total % _LANE != 0:
        # Odd shapes: keep the natural (batch*chan, spatial) view; blocks still
        # span the full last dim, so they remain contiguous.
        # TODO(synk): pathological case of a single enormous non-128-multiple
        # row is not re-tiled along lanes here.
        return fallback_rl
    cap_k = max(1, min(block_bytes // (sub * itemsize * _LANE), total // _LANE))
    best_any = None
    for k in range(cap_k, 0, -1):
        L = _LANE * k
        if total % L:
            continue
        if best_any is None:
            best_any = L
        if (total // L) % sub == 0:
            return (total // L, L)
    L = best_any  # k == 1 always divides, so best_any is set.
    return (total // L, L)


def _choose_block_rows(R, L, itemsize, cfg, sub):
    """Rows per grid block: (8,128)-legal, ~block_bytes, megacore-aware."""
    if R <= sub:
        return R  # block dim == full array dim: always legal, single step.
    row_bytes = L * itemsize
    target_rows = max(1, cfg["block_bytes"] // row_bytes)
    block_r = max(sub, _round_down(min(target_rows, R), sub))
    if cfg["multi_core"] and R >= 4 * sub:
        # Each TensorCore should get >= 2 pipelined steps: cap block_r so the
        # parallel grid has >= 4 steps, then nudge the step count even so the
        # two cores stay load-balanced.
        block_r = min(block_r, max(sub, _round_down(R // 4, sub)))
        steps = _cdiv(R, block_r)
        if steps % 2:
            cand = _round_up(_cdiv(R, steps + 1), sub)
            if sub <= cand <= block_r and _cdiv(R, cand) % 2 == 0:
                block_r = cand
    return block_r


def _ddpm_forward_kernel(coef_ref, x_ref, eta_ref, out_ref):
    # coef_ref (SMEM, f32): [sqrt(alpha_bar[t]), sqrt(1 - alpha_bar[t])].
    x = x_ref[...].astype(jnp.float32)
    e = eta_ref[...].astype(jnp.float32)
    out_ref[...] = (coef_ref[0] * x + coef_ref[1] * e).astype(out_ref.dtype)


def make_alpha_bars(n_steps=100, min_beta=1e-4, max_beta=0.02):
    betas = jnp.linspace(min_beta, max_beta, n_steps, dtype=jnp.float32)
    alphas = 1.0 - betas
    return jnp.cumprod(alphas)


@partial(jax.jit, static_argnames=("donate_x", "stream_bf16"))
def ddpm_forward(x, t, eta, alpha_bars, *, donate_x=False, stream_bf16=False):
    """x, eta: (B, C, H, W); t: scalar int; alpha_bars: (n_steps,) f32.

    donate_x:    alias x with the output HBM buffer (effective when the caller
                 donates x, e.g. inside a sampling loop).
    stream_bf16: opt-in precision change — stream x/eta/out as bf16 (blend math
                 stays f32 inside the kernel); ~2x end-to-end on this
                 HBM-bound op.
    """
    B, C, H, W = x.shape
    if stream_bf16:
        x = x.astype(jnp.bfloat16)
        eta = eta.astype(jnp.bfloat16)
    dtype = x.dtype
    itemsize = jnp.dtype(dtype).itemsize
    total = B * C * H * W

    cfg = _chip_config()
    sub = _SUBLANE_32B * max(1, 4 // itemsize)  # 8 rows for f32, 16 for bf16
    R, L = _choose_view(total, (B * C, H * W), itemsize, cfg["block_bytes"], sub)
    block_r = _choose_block_rows(R, L, itemsize, cfg, sub)
    grid = (_cdiv(R, block_r),)

    x2 = x.reshape(R, L)
    e2 = eta.reshape(R, L)

    # Hoist schedule lookup + sqrt out of the grid loop: two f32 scalars in SMEM.
    ab = alpha_bars[jnp.asarray(t, jnp.int32).reshape(())]
    coefs = jnp.stack([jnp.sqrt(ab), jnp.sqrt(1.0 - ab)]).astype(jnp.float32)

    out2 = pl.pallas_call(
        _ddpm_forward_kernel,
        out_shape=jax.ShapeDtypeStruct((R, L), dtype),
        grid_spec=pltpu.PrefetchScalarGridSpec(
            num_scalar_prefetch=1,  # coefs -> SMEM
            grid=grid,
            in_specs=[
                pl.BlockSpec((block_r, L), lambda i, c: (i, 0)),
                pl.BlockSpec((block_r, L), lambda i, c: (i, 0)),
            ],
            out_specs=pl.BlockSpec((block_r, L), lambda i, c: (i, 0)),
        ),
        compiler_params=pltpu.CompilerParams(
            dimension_semantics=("parallel",),
            vmem_limit_bytes=cfg["vmem_limit"],
        ),
        # Operand 0 is the scalar-prefetch coefs, so x2 is operand index 1.
        input_output_aliases={1: 0} if donate_x else {},
    )(coefs, x2, e2)

    return out2.reshape(B, C, H, W)


def ddpm_forward_ref(x, t, eta, alpha_bars):
    ab = alpha_bars[t]
    return jnp.sqrt(ab) * x + jnp.sqrt(1.0 - ab) * eta


if __name__ == "__main__":
    key = jax.random.PRNGKey(0)
    n_steps = 100
    alpha_bars = make_alpha_bars(n_steps=n_steps)

    # Small smoke-test shape consistent with the module's forward (NCHW).
    kx, ke, kx2, ke2 = jax.random.split(key, 4)
    B, C, H, W = 2, 4, 16, 16
    x = jax.random.normal(kx, (B, C, H, W), dtype=jnp.float32)
    eta = jax.random.normal(ke, (B, C, H, W), dtype=jnp.float32)
    t = jnp.int32(37)

    out = jax.block_until_ready(ddpm_forward(x, t, eta, alpha_bars))
    ref = ddpm_forward_ref(x, t, eta, alpha_bars)
    assert out.shape == (B, C, H, W)
    assert jnp.allclose(out, ref, atol=1e-5, rtol=1e-5), "mismatch vs reference (small)"

    # Shape matching the module's image_shape (1, 128, 128).
    B2, C2, H2, W2 = 2, 1, 128, 128
    x_l = jax.random.normal(kx2, (B2, C2, H2, W2), dtype=jnp.float32)
    eta_l = jax.random.normal(ke2, (B2, C2, H2, W2), dtype=jnp.float32)
    t_l = jnp.int32(91)

    out_l = jax.block_until_ready(ddpm_forward(x_l, t_l, eta_l, alpha_bars))
    ref_l = ddpm_forward_ref(x_l, t_l, eta_l, alpha_bars)
    assert out_l.shape == (B2, C2, H2, W2)
    assert jnp.allclose(out_l, ref_l, atol=1e-5, rtol=1e-5), "mismatch vs reference (128x128)"

    # Output-aliasing path (x buffer donated to the output when possible).
    out_d = jax.block_until_ready(ddpm_forward(x, t, eta, alpha_bars, donate_x=True))
    assert jnp.allclose(out_d, ref, atol=1e-5, rtol=1e-5), "mismatch vs reference (donate_x)"

    # Opt-in bf16 streaming path (blend math stays f32 inside the kernel).
    out_b = jax.block_until_ready(ddpm_forward(x, t, eta, alpha_bars, stream_bf16=True))
    assert jnp.allclose(out_b.astype(jnp.float32), ref, atol=5e-2, rtol=5e-2), \
        "mismatch vs reference (bf16 streams)"

    # TODO(synk): time_step=False branch (pure randn output) and eta=None
    # sampling are host-side RNG concerns, not kernel compute; eta is passed
    # explicitly here for determinism.
    print("KERNEL_OK")
</pallas_src>

<mosaic_0001>
module attributes {stable_mosaic.version = 11 : i64} {
  func.func @_ddpm_forward_kernel(%arg0: i32, %arg1: memref<2xf32, #tpu.memory_space<smem>>, %arg2: memref<8x256xf32, #tpu.memory_space<vmem>>, %arg3: memref<8x256xf32, #tpu.memory_space<vmem>>, %arg4: memref<8x256xf32, #tpu.memory_space<vmem>>) attributes {dimension_semantics = [#tpu.dimension_semantics<parallel>], iteration_bounds = array<i64: 1>, scalar_prefetch = 1 : i64, scratch_operands = 0 : i64, tpu.core_type = #tpu.core_type<tc>, window_params = [{transform_indices = @transform_0, window_bounds = array<i64: 8, 256>}, {transform_indices = @transform_1, window_bounds = array<i64: 8, 256>}, {transform_indices = @transform_2, window_bounds = array<i64: 8, 256>}]} {
    %c0 = arith.constant 0 : index
    %c0_0 = arith.constant 0 : index
    %0 = vector.load %arg2[%c0, %c0_0] : memref<8x256xf32, #tpu.memory_space<vmem>>, vector<8x256xf32>
    %c0_1 = arith.constant 0 : index
    %c0_2 = arith.constant 0 : index
    %1 = vector.load %arg3[%c0_1, %c0_2] : memref<8x256xf32, #tpu.memory_space<vmem>>, vector<8x256xf32>
    %c0_3 = arith.constant 0 : index
    %2 = memref.load %arg1[%c0_3] : memref<2xf32, #tpu.memory_space<smem>>
    %3 = vector.broadcast %2 : f32 to vector<8x256xf32>
    %4 = arith.mulf %3, %0 : vector<8x256xf32>
    %c1 = arith.constant 1 : index
    %5 = memref.load %arg1[%c1] : memref<2xf32, #tpu.memory_space<smem>>
    %6 = vector.broadcast %5 : f32 to vector<8x256xf32>
    %7 = arith.mulf %6, %1 : vector<8x256xf32>
    %8 = arith.addf %4, %7 : vector<8x256xf32>
    %c0_4 = arith.constant 0 : index
    %c0_5 = arith.constant 0 : index
    %9 = vector.load %arg4[%c0_4, %c0_5] : memref<8x256xf32, #tpu.memory_space<vmem>>, vector<8x256xf32>
    tpu.vector_store %arg4[%c0_4, %c0_5], %8 {strides = array<i32>} : memref<8x256xf32, #tpu.memory_space<vmem>>, vector<8x256xf32>,
    return
  }
  func.func @transform_0(%arg0: i32, %arg1: memref<2xf32, #tpu.memory_space<smem>>) -> (i32, i32) {
    %c0_i32 = arith.constant 0 : i32
    %c0_i32_0 = arith.constant 0 : i32
    return %arg0, %c0_i32 : i32, i32
  }
  func.func @transform_1(%arg0: i32, %arg1: memref<2xf32, #tpu.memory_space<smem>>) -> (i32, i32) {
    %c0_i32 = arith.constant 0 : i32
    %c0_i32_0 = arith.constant 0 : i32
    return %arg0, %c0_i32 : i32, i32
  }
  func.func @transform_2(%arg0: i32, %arg1: memref<2xf32, #tpu.memory_space<smem>>) -> (i32, i32) {
    %c0_i32 = arith.constant 0 : i32
    %c0_i32_0 = arith.constant 0 : i32
    return %arg0, %c0_i32 : i32, i32
  }
}

</mosaic_0001>

<bundles_post_ra>
// kernel: ddpm_forward.1
= control target key start
LH: loop header
LB: loop body
LE: loop exit
PB: predicated region body
PF: predicated region fallthrough
CT: control target
= control target key end

     0   :  { %s96_s0 = inlined_call_operand.vmem [shape: f32[2], index: 0, kind: input, shape index: {}]   ;;  %s97_s1 = inlined_call_operand.vmem [shape: f32[8,256], index: 1, kind: input, shape index: {}]   ;;  %s98_s2 = inlined_call_operand.vmem [shape: f32[8,256], index: 2, kind: input, shape index: {}]   ;;  %s99_s3 = inlined_call_operand.vmem [shape: f32[8,256], index: 3, kind: output, shape index: {}]  }
   0x1   :  { %s8_s14 = sshll.u32 %s96_s0, 4  ;;  %s9_s14 = int_to_ptr.vmem [resolvable:$true] %s8_s14 }
   0x2   :  { %s40_s15 = scalar_lea.vmem %s9_s14, 16  ;;  %p45_p1 = scmp.lt.s32.totalorder %s9_s14, %s9_s14 }
   0x3   :  { %p41_p0 = scmp.ne.s32.totalorder %s9_s14, %s40_s15  ;;  %p46_p2 = scmp.lt.s32.totalorder %s40_s15, %s40_s15 }
   0x5   :  { %p47_p3 = por %p46_p2, %p45_p1 }
   0x7   :  { %p48_p4 = pnand %p47_p3, %p41_p0 }
   0x9   :  { %51 = shalt.err (!%p48_p4)  }
   0xa   :  { %s54_s16 = smov [#allocation3]  }
   0xb   :  { %11 = dma.vmem_to_smem %s9_s14, 16, %s54_s16, [#allocation2] }
   0xc   :  { %52 = dma.done.wait [#allocation2], 16 }
   0xd   :  { %53 = vsyncadd [#allocation2], 4294967280 }
   0xe   :  { %13 = sfence }
   0xf   :  { %s22_s17 = sld [smem:[#allocation3]]  ;;  %s38_s18 = sld [smem:[#allocation3 + $0x1]]  ;;  %v18_v0 = vld [vmem:[%s97_s1] sm:$0xff]  ;;  %v19_v2 = vld [vmem:[%s97_s1 + $0x8] sm:$0xff] }
  0x10   :  { %v20_v1 = vld [vmem:[%s98_s2] sm:$0xff]  ;;  %v21_v3 = vld [vmem:[%s98_s2 + $0x8] sm:$0xff] }
  0x15   :  { %v23_v4 = vstv %s22_s17  ;;  %v27_v5 = vstv %s38_s18 }
  0x16   :  { %v24_v6 = vmul.f32 %v23_v4, %v18_v0  ;;  %v28_v7 = vmul.f32 %v27_v5, %v20_v1  ;;  %v25_v8 = vmul.f32 %v23_v4, %v19_v2  ;;  %v29_v9 = vmul.f32 %v27_v5, %v21_v3 }
  0x18   :  { %v30_v10 = vadd.f32 %v28_v7, %v24_v6  ;;  %v31_v11 = vadd.f32 %v29_v9, %v25_v8 }
  0x1a   :  { %32 = vst [vmem:[%s99_s3] sm:$0xff] %v30_v10  ;;  %33 = vst [vmem:[%s99_s3 + $0x8] sm:$0xff] %v31_v11 }

</bundles_post_ra>
